<compile_context>
chip_gen: v5e
topology: v5e:2x2
jax: 0.10.0
libtpu: 0.0.40
codegen_flags: <defaults>
</compile_context>

<pallas_src>
import functools

import jax
import jax.numpy as jnp
from jax.experimental import pallas as pl
from jax.experimental.pallas import tpu as pltpu


_VMEM_LIMIT = 32 * 1024 * 1024      # explicit scoped-VMEM cap, safe on v5e/v6e/v7x


def _cparams(sem):
    return pltpu.CompilerParams(dimension_semantics=sem,
                                vmem_limit_bytes=_VMEM_LIMIT)


def _row_gather(mat, col_idx):
    """out[r, :] = mat[col_idx[r, 0], :] - row gather on a VMEM-resident 2D value."""
    idxb = jnp.broadcast_to(col_idx, mat.shape)
    return jnp.take_along_axis(mat, idxb, axis=0, mode="promise_in_bounds")


# ----------------------------------------------------------------------------
# capability probe: does in-kernel row gather (take_along_axis axis=0) lower?
# ----------------------------------------------------------------------------
def _gather_probe_kernel(src_ref, idx_ref, o_ref):
    o_ref[...] = _row_gather(src_ref[...], idx_ref[...][:, 3:4])


def _supports_in_kernel_row_gather():
    try:
        n, kk = 128, 16
        for cols in (128, 256):                      # widths used by the real kernels
            src = jax.random.normal(jax.random.PRNGKey(1), (n, cols), jnp.float32)
            idx = jax.random.randint(jax.random.PRNGKey(2), (n, kk), 0, n, jnp.int32)
            out = pl.pallas_call(
                _gather_probe_kernel,
                out_shape=jax.ShapeDtypeStruct((n, cols), jnp.float32),
            )(src, idx)
            out = jax.block_until_ready(out)
            if not bool(jnp.array_equal(out, src[idx[:, 3]])):
                return False
        return True
    except Exception:                                # lowering / Mosaic rejection -> fallback
        return False


# ----------------------------------------------------------------------------
# Pallas kernels
# ----------------------------------------------------------------------------
def _negdist_kernel(xr_ref, xc_ref, o_ref):
    # Ranking-only "negative distance": 2*x_i.x_j - ||x_j||^2 (row-constant term dropped).
    # Do NOT reuse this output where true distances are required.
    xr = xr_ref[0]                                                   # (tr, C) f32
    xc = xc_ref[0]                                                   # (N, C)  f32
    inner = jax.lax.dot_general(xr, xc, (((1,), (1,)), ((), ())),
                                preferred_element_type=jnp.float32)  # (tr, N)
    csq = jnp.sum(xc * xc, axis=-1, keepdims=True)                   # (N, 1)
    o_ref[0] = 2.0 * inner - csq.T


def _edge_fused_kernel(idx_ref, x_ref, w_ref, b_ref, o_ref):
    # Full EdgeConv for one batch element: fused matmul + in-kernel neighbor gather + max.
    #   AC = x @ [Wd*s | (Wc-Wd)*s];  out = ReLU(max_j AC[idx[:,j], :Cout] + AC[:, Cout:] + b)
    half = w_ref.shape[1] // 2
    k = idx_ref.shape[2]
    x = x_ref[0].astype(jnp.bfloat16)                                # (N, Cin)
    ac = jnp.dot(x, w_ref[...], preferred_element_type=jnp.float32)  # (N, 2*Cout)
    idx = idx_ref[0]                                                 # (N, k) int32
    acc = jnp.full(ac.shape, -jnp.inf, jnp.float32)
    for j in range(k):                                               # unrolled, stays in VMEM
        acc = jnp.maximum(acc, _row_gather(ac, idx[:, j:j + 1]))
    o_ref[0] = jnp.maximum(acc[:, :half] + ac[:, half:] + b_ref[...], 0.0)


def _edge_pre_kernel(x_ref, w_ref, b_ref, a_ref, c_ref):
    # Fallback path pre-matmul (single fused MXU pass): A (bf16, gather source), C (f32).
    half = w_ref.shape[1] // 2
    x = x_ref[0].astype(jnp.bfloat16)
    ac = jnp.dot(x, w_ref[...], preferred_element_type=jnp.float32)
    a_ref[0] = ac[:, :half].astype(jnp.bfloat16)
    c_ref[0] = ac[:, half:] + b_ref[...]


def _edge_reduce_kernel(g_ref, c_ref, o_ref):
    # Fallback path reduction: g is the XLA-gathered A rows, (1, k, N, Cout) bf16.
    k = g_ref.shape[1]
    acc = jnp.full(c_ref.shape[1:], -jnp.inf, jnp.float32)
    for j in range(k):
        acc = jnp.maximum(acc, g_ref[0, j].astype(jnp.float32))
    o_ref[0] = jnp.maximum(acc + c_ref[0], 0.0)


def _tnet_fused_kernel(idx_ref, pc_ref, w1_ref, b1_ref, w2_ref, b2_ref, o_ref):
    # transform_net conv1(6->64) + conv2(64->128) + max over k, with in-kernel gather.
    half = w1_ref.shape[1] // 2
    k = idx_ref.shape[2]
    pc = pc_ref[0].astype(jnp.bfloat16)                               # (N, 3)
    p = jnp.dot(pc, w1_ref[...], preferred_element_type=jnp.float32)  # (N, 128) = [A1 | C1raw]
    c1 = p[:, half:] + b1_ref[...]                                    # j-invariant, hoisted
    idx = idx_ref[0]                                                  # (N, k)
    acc = jnp.full((p.shape[0], w2_ref.shape[1]), -jnp.inf, jnp.float32)
    for j in range(k):
        g = _row_gather(p, idx[:, j:j + 1])                           # (N, 128)
        h1 = jnp.maximum(g[:, :half] + c1, 0.0).astype(jnp.bfloat16)  # (N, 64)
        h2 = jnp.dot(h1, w2_ref[...], preferred_element_type=jnp.float32) + b2_ref[...]
        acc = jnp.maximum(acc, h2)
    o_ref[0] = jnp.maximum(acc, 0.0)                                  # ReLU after max (equiv.)


def _tnet_reduce_kernel(g_ref, c_ref, w2_ref, b2_ref, o_ref):
    # Fallback transform_net head: g = XLA-gathered A1 rows (1, k, N, 64) bf16.
    k = g_ref.shape[1]
    c1 = c_ref[0]
    acc = jnp.full((c1.shape[0], w2_ref.shape[1]), -jnp.inf, jnp.float32)
    for j in range(k):
        h1 = jnp.maximum(g_ref[0, j].astype(jnp.float32) + c1, 0.0).astype(jnp.bfloat16)
        h2 = jnp.dot(h1, w2_ref[...], preferred_element_type=jnp.float32) + b2_ref[...]
        acc = jnp.maximum(acc, h2)
    o_ref[0] = jnp.maximum(acc, 0.0)


def _make_conv_maxrows_kernel(n_in):
    # sum_i x_i @ w_i  -> +bias -> ReLU -> running max over the N (point) axis.
    def kernel(*refs):
        x_refs = refs[:n_in]
        w_refs = refs[n_in:2 * n_in]
        b_ref, o_ref, acc_ref = refs[2 * n_in:]

        @pl.when(pl.program_id(1) == 0)
        def _():
            acc_ref[...] = jnp.full(acc_ref.shape, -jnp.inf, acc_ref.dtype)

        y = jnp.dot(x_refs[0][0].astype(jnp.bfloat16), w_refs[0][...],
                    preferred_element_type=jnp.float32)
        for xr, wr in zip(x_refs[1:], w_refs[1:]):
            y = y + jnp.dot(xr[0].astype(jnp.bfloat16), wr[...],
                            preferred_element_type=jnp.float32)
        y = jnp.maximum(y + b_ref[...], 0.0)                          # (tn, Cout)
        acc_ref[...] = jnp.maximum(acc_ref[...], jnp.max(y, axis=0, keepdims=True))

        @pl.when(pl.program_id(1) == pl.num_programs(1) - 1)
        def _():
            o_ref[0] = acc_ref[...]
    return kernel


def _fc_stack_kernel(x_ref, w1_ref, b1_ref, w2_ref, b2_ref, w3_ref, b3_ref, o_ref):
    # transform_net FC stack fused: fc1+BN+ReLU -> fc2+BN+ReLU -> fc3 (+identity bias).
    h = x_ref[...].astype(jnp.bfloat16)
    h = jnp.maximum(jnp.dot(h, w1_ref[...], preferred_element_type=jnp.float32)
                    + b1_ref[...], 0.0)
    h = jnp.maximum(jnp.dot(h.astype(jnp.bfloat16), w2_ref[...],
                            preferred_element_type=jnp.float32) + b2_ref[...], 0.0)
    o_ref[...] = (jnp.dot(h.astype(jnp.bfloat16), w3_ref[...],
                          preferred_element_type=jnp.float32) + b3_ref[...])


# ----------------------------------------------------------------------------
# pallas_call wrappers
# ----------------------------------------------------------------------------
def pairwise_negdist(x):
    B, N, C = x.shape
    tr = N if N <= 512 else 256
    assert N % tr == 0
    return pl.pallas_call(
        _negdist_kernel,
        out_shape=jax.ShapeDtypeStruct((B, N, N), jnp.float32),
        grid=(B, N // tr),
        in_specs=[pl.BlockSpec((1, tr, C), lambda b, r: (b, r, 0)),
                  pl.BlockSpec((1, N, C), lambda b, r: (b, 0, 0))],
        out_specs=pl.BlockSpec((1, tr, N), lambda b, r: (b, r, 0)),
        compiler_params=_cparams(("parallel", "parallel")),
    )(x, x)


def knn_idx(x, k):
    """x: (B, N, C) f32 -> neighbor indices (B, N, k) (self included)."""
    negdist = pairwise_negdist(x)
    _, idx = jax.lax.top_k(negdist, k)        # exact top-k; approx_max_k left as TODO
    return idx


def gather_rows_kmajor(a, idx):
    """a: (B, N, C), idx: (B, N, k) -> gathered rows, k-major: (B, k, N, C) (XLA fallback)."""
    B = a.shape[0]
    bidx = jnp.arange(B)[:, None, None]
    idx_t = jnp.transpose(idx, (0, 2, 1))
    return a[bidx, idx_t]


def _edge_conv_fused(idx, x, w, beta):
    B, N, cin = x.shape
    k = idx.shape[-1]
    cout = w.shape[1] // 2
    return pl.pallas_call(
        _edge_fused_kernel,
        out_shape=jax.ShapeDtypeStruct((B, N, cout), jnp.float32),
        grid=(B,),
        in_specs=[
            pl.BlockSpec((1, N, k), lambda b: (b, 0, 0)),
            pl.BlockSpec((1, N, cin), lambda b: (b, 0, 0)),
            pl.BlockSpec(w.shape, lambda b: (0, 0)),
            pl.BlockSpec((1, cout), lambda b: (0, 0)),
        ],
        out_specs=pl.BlockSpec((1, N, cout), lambda b: (b, 0, 0)),
        compiler_params=_cparams(("parallel",)),
    )(idx, x, w, beta.reshape(1, -1))


def edge_pre(x, w, beta):
    B, N, cin = x.shape
    cout = w.shape[1] // 2
    return pl.pallas_call(
        _edge_pre_kernel,
        out_shape=(jax.ShapeDtypeStruct((B, N, cout), jnp.bfloat16),
                   jax.ShapeDtypeStruct((B, N, cout), jnp.float32)),
        grid=(B,),
        in_specs=[
            pl.BlockSpec((1, N, cin), lambda b: (b, 0, 0)),
            pl.BlockSpec(w.shape, lambda b: (0, 0)),
            pl.BlockSpec((1, cout), lambda b: (0, 0)),
        ],
        out_specs=(pl.BlockSpec((1, N, cout), lambda b: (b, 0, 0)),
                   pl.BlockSpec((1, N, cout), lambda b: (b, 0, 0))),
        compiler_params=_cparams(("parallel",)),
    )(x, w, beta.reshape(1, -1))


def edge_reduce(g, c):
    B, k, N, cout = g.shape
    return pl.pallas_call(
        _edge_reduce_kernel,
        out_shape=jax.ShapeDtypeStruct((B, N, cout), jnp.float32),
        grid=(B,),
        in_specs=[pl.BlockSpec((1, k, N, cout), lambda b: (b, 0, 0, 0)),
                  pl.BlockSpec((1, N, cout), lambda b: (b, 0, 0))],
        out_specs=pl.BlockSpec((1, N, cout), lambda b: (b, 0, 0)),
        compiler_params=_cparams(("parallel",)),
    )(g, c)


def edge_conv(x, k, params, use_fused_gather):
    """One restructured _baseEdgeConv layer (dynamic kNN graph built on x)."""
    w, beta = params
    idx = knn_idx(x, k)                       # f32 distance path (graph unchanged)
    if use_fused_gather:
        return _edge_conv_fused(idx, x, w, beta)
    a, c = edge_pre(x, w, beta)               # A in bf16 (halves gather HBM traffic)
    g = gather_rows_kmajor(a, idx)            # XLA row gather fallback
    return edge_reduce(g, c)


def _tnet_head_fused(pc, idx, p1, p2):
    B, N, _ = pc.shape
    k = idx.shape[-1]
    w1, b1 = p1
    w2, b2 = p2
    cout = w2.shape[1]
    return pl.pallas_call(
        _tnet_fused_kernel,
        out_shape=jax.ShapeDtypeStruct((B, N, cout), jnp.float32),
        grid=(B,),
        in_specs=[
            pl.BlockSpec((1, N, k), lambda b: (b, 0, 0)),
            pl.BlockSpec((1, N, 3), lambda b: (b, 0, 0)),
            pl.BlockSpec(w1.shape, lambda b: (0, 0)),
            pl.BlockSpec((1, b1.shape[0]), lambda b: (0, 0)),
            pl.BlockSpec(w2.shape, lambda b: (0, 0)),
            pl.BlockSpec((1, cout), lambda b: (0, 0)),
        ],
        out_specs=pl.BlockSpec((1, N, cout), lambda b: (b, 0, 0)),
        compiler_params=_cparams(("parallel",)),
    )(idx, pc, w1, b1.reshape(1, -1), w2, b2.reshape(1, -1))


def _tnet_reduce(g, c, p2):
    B, k, N, chalf = g.shape
    w2, b2 = p2
    cout = w2.shape[1]
    return pl.pallas_call(
        _tnet_reduce_kernel,
        out_shape=jax.ShapeDtypeStruct((B, N, cout), jnp.float32),
        grid=(B,),
        in_specs=[
            pl.BlockSpec((1, k, N, chalf), lambda b: (b, 0, 0, 0)),
            pl.BlockSpec((1, N, chalf), lambda b: (b, 0, 0)),
            pl.BlockSpec(w2.shape, lambda b: (0, 0)),
            pl.BlockSpec((1, cout), lambda b: (0, 0)),
        ],
        out_specs=pl.BlockSpec((1, N, cout), lambda b: (b, 0, 0)),
        compiler_params=_cparams(("parallel",)),
    )(g, c, w2, b2.reshape(1, -1))


def tnet_head(pc, idx, p1, p2, use_fused_gather):
    """Fused transform_net conv1+conv2+max-over-k.  pc: (B,N,3) -> (B,N,128)."""
    if use_fused_gather:
        return _tnet_head_fused(pc, idx, p1, p2)
    w1, b1 = p1
    a1, c1 = edge_pre(pc, w1, b1)
    g1 = gather_rows_kmajor(a1, idx)
    return _tnet_reduce(g1, c1, p2)


def conv_maxrows(xs, ws, bias):
    """ReLU(sum_i x_i @ w_i + bias) followed by max over the point axis -> (B, Cout)."""
    B, N, _ = xs[0].shape
    cout = ws[0].shape[1]
    tn = N if N <= 256 else 256
    assert N % tn == 0
    in_specs = ([pl.BlockSpec((1, tn, x.shape[2]), lambda b, r: (b, r, 0)) for x in xs]
                + [pl.BlockSpec(w.shape, lambda b, r: (0, 0)) for w in ws]
                + [pl.BlockSpec((1, cout), lambda b, r: (0, 0))])
    out = pl.pallas_call(
        _make_conv_maxrows_kernel(len(xs)),
        out_shape=jax.ShapeDtypeStruct((B, 1, cout), jnp.float32),
        grid=(B, N // tn),
        in_specs=in_specs,
        out_specs=pl.BlockSpec((1, 1, cout), lambda b, r: (b, 0, 0)),
        scratch_shapes=[pltpu.VMEM((1, cout), jnp.float32)],
        compiler_params=_cparams(("parallel", "arbitrary")),
    )(*xs, *ws, bias.reshape(1, -1))
    return out[:, 0, :]


def fc_stack(x, p1, p2, p3):
    """Fused fc1(relu) -> fc2(relu) -> fc3(linear+bias).  x: (B, 1024) -> (B, 9)."""
    B, c0 = x.shape
    w1, b1 = p1
    w2, b2 = p2
    w3, b3 = p3
    c1, c2, c3 = w1.shape[1], w2.shape[1], w3.shape[1]
    return pl.pallas_call(
        _fc_stack_kernel,
        out_shape=jax.ShapeDtypeStruct((B, c3), jnp.float32),
        grid=(1,),
        in_specs=[
            pl.BlockSpec((B, c0), lambda i: (0, 0)),
            pl.BlockSpec((c0, c1), lambda i: (0, 0)),
            pl.BlockSpec((1, c1), lambda i: (0, 0)),
            pl.BlockSpec((c1, c2), lambda i: (0, 0)),
            pl.BlockSpec((1, c2), lambda i: (0, 0)),
            pl.BlockSpec((c2, c3), lambda i: (0, 0)),
            pl.BlockSpec((1, c3), lambda i: (0, 0)),
        ],
        out_specs=pl.BlockSpec((B, c3), lambda i: (0, 0)),
        compiler_params=_cparams(("arbitrary",)),
    )(x, w1, b1.reshape(1, -1), w2, b2.reshape(1, -1), w3, b3.reshape(1, -1))


# ----------------------------------------------------------------------------
# DGCNN forward (mirrors DGCNN_cls_feature.forward)
# ----------------------------------------------------------------------------
def dgcnn_cls_feature(pc, params, k, use_fused_gather):
    """pc: (B, N, 3) -> (B, 1024)."""
    B, N, _ = pc.shape

    # ---- transform_net ----------------------------------------------------
    idx0 = knn_idx(pc, k)
    h = tnet_head(pc, idx0, params["t_conv1"], params["t_conv2"], use_fused_gather)
    w3, b3 = params["t_conv3"]
    g = conv_maxrows([h], [w3], b3)                                    # (B, 1024)
    t = fc_stack(g, params["t_fc1"], params["t_fc2"], params["t_fc3"])  # (B, 9)
    T = t.reshape(B, 3, 3)
    x = jnp.einsum("bnc,bcd->bnd", pc, T)                              # tiny 3x3 bmm (XLA)

    # ---- dynamic-graph edge convolutions ----------------------------------
    f1 = edge_conv(x, k, params["ec1_1"], use_fused_gather)            # (B, N, 64)
    f2 = edge_conv(f1, k, params["ec1_2"], use_fused_gather)           # (B, N, 64)
    f3 = edge_conv(f2, k, params["ec1_3"], use_fused_gather)           # (B, N, 64)
    f4 = edge_conv(f3, k, params["ec2_1"], use_fused_gather)           # (B, N, 128)

    # ---- shared MLP (320 -> 1024) + global max, concat-free -----------------
    mlp_ws, mlp_b = params["mlp"]
    return conv_maxrows([f1, f2, f3, f4], list(mlp_ws), mlp_b)         # (B, 1024)


# ----------------------------------------------------------------------------
# deterministic synthetic parameters (BN folded: running_mean=0, running_var=1)
# ----------------------------------------------------------------------------
def _raw_conv_bn(key, cin, cout, eps=1e-5):
    kw, kg, kb = jax.random.split(key, 3)
    w = 0.1 * jax.random.normal(kw, (cin, cout), jnp.float32)
    gamma = 1.0 + 0.1 * jax.random.normal(kg, (cout,), jnp.float32)
    beta = 0.05 * jax.random.normal(kb, (cout,), jnp.float32)
    scale = gamma / jnp.sqrt(1.0 + eps)
    return w, scale, beta


def _folded_conv_params(key, cin, cout):
    w, scale, beta = _raw_conv_bn(key, cin, cout)
    return (w * scale).astype(jnp.bfloat16), beta


def _edgeconv_params(key, cin, cout):
    """Conv over [nbr-center, center] (2*cin channels); BN scale folded and the weight split
    into the gathered-neighbor part and center part, fused into one (cin, 2*cout) matrix."""
    w, scale, beta = _raw_conv_bn(key, 2 * cin, cout)
    wd, wc = w[:cin], w[cin:]
    w_fused = jnp.concatenate([wd * scale, (wc - wd) * scale], axis=1).astype(jnp.bfloat16)
    return w_fused, beta


def make_params(key):
    keys = jax.random.split(key, 12)
    w_mlp, b_mlp = _folded_conv_params(keys[10], 320, 1024)
    mlp_ws = (w_mlp[:64], w_mlp[64:128], w_mlp[128:192], w_mlp[192:])   # concat-free split
    return {
        # transform_net
        "t_conv1": _edgeconv_params(keys[0], 3, 64),
        "t_conv2": _folded_conv_params(keys[1], 64, 128),
        "t_conv3": _folded_conv_params(keys[2], 128, 1024),
        "t_fc1": _folded_conv_params(keys[3], 1024, 512),
        "t_fc2": _folded_conv_params(keys[4], 512, 256),
        # final 256 -> 9 linear with identity-initialized bias
        "t_fc3": (0.01 * jax.random.normal(keys[5], (256, 9), jnp.float32)
                  .astype(jnp.bfloat16),
                  jnp.eye(3, dtype=jnp.float32).reshape(-1)),
        # edge convolutions
        "ec1_1": _edgeconv_params(keys[6], 3, 64),
        "ec1_2": _edgeconv_params(keys[7], 64, 64),
        "ec1_3": _edgeconv_params(keys[8], 64, 64),
        "ec2_1": _edgeconv_params(keys[9], 64, 128),
        # final shared mlp (320 -> 1024) + global max
        "mlp": (mlp_ws, b_mlp),
    }


# ----------------------------------------------------------------------------
# pure-JAX reference for one EdgeConv layer (validates the gather/reduce path)
# ----------------------------------------------------------------------------
def _edge_conv_ref(x, idx, params):
    w, beta = params
    cout = w.shape[1] // 2
    ac = jnp.einsum("bnc,cd->bnd", x.astype(jnp.bfloat16), w,
                    preferred_element_type=jnp.float32)
    a, c = ac[..., :cout], ac[..., cout:] + beta
    bidx = jnp.arange(x.shape[0])[:, None, None]
    g = a[bidx, idx]                                     # (B, N, k, cout)
    return jnp.maximum(jnp.max(g, axis=2) + c, 0.0)


if __name__ == "__main__":
    B, N, K = 2, 128, 16        # small shapes (module default k=20, N ~ 1024)
    key = jax.random.PRNGKey(0)
    k_in, k_par = jax.random.split(key)
    pc = jax.random.normal(k_in, (B, N, 3), jnp.float32)      # input: B x N x 3
    params = make_params(k_par)

    use_fused = _supports_in_kernel_row_gather()

    # spot-check the (riskiest) EdgeConv path against a pure-JAX reference
    idx_chk = knn_idx(pc, K)
    got = edge_conv(pc, K, params["ec1_1"], use_fused)
    want = _edge_conv_ref(pc, idx_chk, params["ec1_1"])
    if not bool(jnp.allclose(got, want, rtol=2e-2, atol=2e-2)):
        raise AssertionError("edge_conv mismatch vs pure-JAX reference")

    fwd = jax.jit(functools.partial(dgcnn_cls_feature, k=K, use_fused_gather=use_fused))
    out = jax.block_until_ready(fwd(pc, params))

    assert out.shape == (B, 1024), out.shape
    assert bool(jnp.all(jnp.isfinite(out)))
    print("KERNEL_OK")
</pallas_src>

<mosaic_0001>
module attributes {stable_mosaic.version = 11 : i64} {
  func.func @_gather_probe_kernel(%arg0: memref<128x128xf32, #tpu.memory_space<vmem>>, %arg1: memref<128x16xi32, #tpu.memory_space<vmem>>, %arg2: memref<128x128xf32, #tpu.memory_space<vmem>>) attributes {dimension_semantics = [], scalar_prefetch = 0 : i64, scratch_operands = 0 : i64, tpu.core_type = #tpu.core_type<tc>} {
    %c0 = arith.constant 0 : index
    %c0_0 = arith.constant 0 : index
    %0 = vector.load %arg0[%c0, %c0_0] : memref<128x128xf32, #tpu.memory_space<vmem>>, vector<128x128xf32>
    %c0_1 = arith.constant 0 : index
    %c0_2 = arith.constant 0 : index
    %1 = vector.load %arg1[%c0_1, %c0_2] : memref<128x16xi32, #tpu.memory_space<vmem>>, vector<128x16xi32>
    %2 = vector.extract_strided_slice %1 {offsets = [0, 3], sizes = [128, 1], strides = [1, 1]} : vector<128x16xi32> to vector<128x1xi32>
    %3 = vector.shape_cast %2 : vector<128x1xi32> to vector<128x1xi32>
    %4 = vector.broadcast %3 : vector<128x1xi32> to vector<128x128xi32>
    %5 = vector.shape_cast %4 : vector<128x128xi32> to vector<128x128x1xi32>
    %6 = vector.shape_cast %5 : vector<128x128x1xi32> to vector<128x128xi32>
    %7 = tpu.dynamic_gather %0[%6] in [0] : vector<128x128xf32>, vector<128x128xi32> -> vector<128x128xf32>
    %c0_3 = arith.constant 0 : index
    %c0_4 = arith.constant 0 : index
    %8 = vector.load %arg2[%c0_3, %c0_4] : memref<128x128xf32, #tpu.memory_space<vmem>>, vector<128x128xf32>
    tpu.vector_store %arg2[%c0_3, %c0_4], %7 {strides = array<i32>} : memref<128x128xf32, #tpu.memory_space<vmem>>, vector<128x128xf32>,
    return
  }
}

module attributes {stable_mosaic.version = 11 : i64} {
  func.func @_negdist_kernel(%arg0: i32, %arg1: i32, %arg2: memref<1x128x3xf32, #tpu.memory_space<vmem>>, %arg3: memref<1x128x3xf32, #tpu.memory_space<vmem>>, %arg4: memref<1x128x128xf32, #tpu.memory_space<vmem>>) attributes {dimension_semantics = [#tpu.dimension_semantics<parallel>, #tpu.dimension_semantics<parallel>], iteration_bounds = array<i64: 2, 1>, scalar_prefetch = 0 : i64, scratch_operands = 0 : i64, tpu.core_type = #tpu.core_type<tc>, window_params = [{transform_indices = @transform_0, window_bounds = array<i64: 1, 128, 3>}, {transform_indices = @transform_1, window_bounds = array<i64: 1, 128, 3>}, {transform_indices = @transform_2, window_bounds = array<i64: 1, 128, 128>}]} {
    %c0 = arith.constant 0 : index
    %c0_0 = arith.constant 0 : index
    %c0_1 = arith.constant 0 : index
    %0 = vector.load %arg2[%c0, %c0_0, %c0_1] : memref<1x128x3xf32, #tpu.memory_space<vmem>>, vector<1x128x3xf32>
    %1 = vector.shape_cast %0 : vector<1x128x3xf32> to vector<128x3xf32>
    %c0_2 = arith.constant 0 : index
    %c0_3 = arith.constant 0 : index
    %c0_4 = arith.constant 0 : index
    %2 = vector.load %arg3[%c0_2, %c0_3, %c0_4] : memref<1x128x3xf32, #tpu.memory_space<vmem>>, vector<1x128x3xf32>
    %3 = vector.shape_cast %2 : vector<1x128x3xf32> to vector<128x3xf32>
    %cst = arith.constant dense<0.000000e+00> : vector<128x128xf32>
    %4 = tpu.matmul %1, %3, %cst {dimension_numbers = #tpu.dot_dimension_numbers<[1], [1], [0], [0], [0, 0, 1, 0], [], []>} : vector<128x3xf32>, vector<128x3xf32>, vector<128x128xf32> -> vector<128x128xf32>
    %5 = arith.mulf %3, %3 : vector<128x3xf32>
    %cst_5 = arith.constant dense<0.000000e+00> : vector<128xf32>
    %6 = vector.multi_reduction <add>, %5, %cst_5 [1] : vector<128x3xf32> to vector<128xf32>
    %7 = vector.shape_cast %6 : vector<128xf32> to vector<128x1xf32>
    %cst_6 = arith.constant 2.000000e+00 : f32
    %8 = vector.broadcast %cst_6 : f32 to vector<128x128xf32>
    %9 = arith.mulf %8, %4 : vector<128x128xf32>
    %10 = tpu.transpose %7, [1, 0] : vector<128x1xf32> -> vector<1x128xf32>
    %11 = vector.broadcast %10 : vector<1x128xf32> to vector<128x128xf32>
    %12 = arith.subf %9, %11 : vector<128x128xf32>
    %c0_7 = arith.constant 0 : index
    %c0_8 = arith.constant 0 : index
    %c0_9 = arith.constant 0 : index
    %13 = vector.load %arg4[%c0_7, %c0_8, %c0_9] : memref<1x128x128xf32, #tpu.memory_space<vmem>>, vector<1x128x128xf32>
    %14 = vector.shape_cast %13 : vector<1x128x128xf32> to vector<128x128xf32>
    %15 = vector.shape_cast %12 : vector<128x128xf32> to vector<1x128x128xf32>
    tpu.vector_store %arg4[%c0_7, %c0_8, %c0_9], %15 {strides = array<i32>} : memref<1x128x128xf32, #tpu.memory_space<vmem>>, vector<1x128x128xf32>,
    return
  }
  func.func @transform_0(%arg0: i32, %arg1: i32) -> (i32, i32, i32) {
    %c0_i32 = arith.constant 0 : i32
    %c0_i32_0 = arith.constant 0 : i32
    return %arg0, %arg1, %c0_i32 : i32, i32, i32
  }
  func.func @transform_1(%arg0: i32, %arg1: i32) -> (i32, i32, i32) {
    %c0_i32 = arith.constant 0 : i32
    %c0_i32_0 = arith.constant 0 : i32
    %c0_i32_1 = arith.constant 0 : i32
    return %arg0, %c0_i32, %c0_i32_0 : i32, i32, i32
  }
  func.func @transform_2(%arg0: i32, %arg1: i32) -> (i32, i32, i32) {
    %c0_i32 = arith.constant 0 : i32
    %c0_i32_0 = arith.constant 0 : i32
    return %arg0, %arg1, %c0_i32 : i32, i32, i32
  }
}

</mosaic_0001>

<bundles_post_ra>
// kernel: tpu_custom_call.1
= control target key start
LH: loop header
LB: loop body
LE: loop exit
PB: predicated region body
PF: predicated region fallthrough
CT: control target
= control target key end

     0   :  { %7 = vsyncpa [#allocation3], 0  ;;  %s1227_s0 = inlined_call_operand.vmem [shape: f32[2,128,3], index: 0, kind: input, shape index: {}]   ;;  %s1228_s1 = inlined_call_operand.vmem [shape: f32[2,128,3], index: 1, kind: input, shape index: {}]   ;;  %s1229_s2 = inlined_call_operand.hbm [shape: f32[2,128,128], index: 2, kind: output, shape index: {}]  }
   0x1   :  { %9 = vsyncpa [#allocation3 + $0x1], 0  ;;  %s893_s9 = smov 0   ;;  %s895_s10 = smov 0  }
   0x2   :  { %s897_s11 = smov 0   ;;  %s899_s12 = smov 0  }
   0x3   :  { %s901_s13 = smov 0   ;;  %s903_s14 = smov 0  }
   0x4 LB: > { %s641_s15 = sadd.s32 4294967295, %s874_s14   ;;  %s642_s16 = sadd.s32 4294967294, %s874_s14   ;;  %s874_s14 = sphi %s903_s14, %s15_s14   ;;  %s870_s13 = sphi %s901_s13, %s1236_s13   ;;  %s866_s12 = sphi %s899_s12, %s1235_s12   ;;  %s862_s11 = sphi %s897_s11, %s1234_s11   ;;  %s858_s10 = sphi %s895_s10, %s1233_s10   ;;  %s854_s9 = sphi %s893_s9, %s1232_s9  }
   0x5   : > { %s27_s17 = sadd.s32 1, %s870_s13  ;;  %s90_s18 = sadd.s32 1, %s862_s11 }
   0x6   : > { %p29_p0 = scmp.ge.s32.totalorder %s27_s17, 2  ;;  %p100_p1 = scmp.ne.s32.totalorder %s862_s11, %s858_s10 }
   0x7   : > { %p101_p2 = scmp.eq.s32.totalorder %s641_s15, 1  ;;  %p106_p3 = scmp.ne.s32.totalorder %s858_s10, %s854_s9 }
   0x8   : > { %s1238_s17 = smov (%p29_p0, %s27_s17), 0  ;;  %p107_p5 = scmp.eq.s32.totalorder %s642_s16, 1 }
   0x9   : > { %p933_p4 = por %p101_p2, %p100_p1  ;;  %s85_s20 = ssub.s32 %s870_s13, %s1238_s17 }
   0xa   : > { %p645_p6 = scmp.ge.s32.totalorder %s874_s14, 1  ;;  %p88_p7 = scmp.eq.s32.totalorder %s85_s20, 0 }
   0xb   : > { %p940_p8 = por %p107_p5, %p106_p3  ;;  %p146_p9 = scmp.lt.s32.totalorder %s874_s14, 3 }
   0xc   : > { %s946_s22 = scalar_select %p88_p7, %s862_s11, %s90_s18  }
   0xd   : > { %p147_p10 = pnand %p645_p6, %p146_p9 }
   0xe   : > { %p178_p11 = scmp.lt.s32.totalorder (!%p147_p10), %s866_s12, 1  ;;  %s174_s3 = sand.u32 (!%p147_p10), 1, %s858_s10  }
   0xf   : > { %150 = sbr.rel (%p147_p10) target bundleno = 332 (0x14c), region = 28  ;;  %s646_s4 = sshll.u32 (!%p147_p10), %s174_s3, 7 }
  0x10   : > { %s1170_s5 = scalar_lea.vmem (!%p147_p10), [#allocation2], %s646_s4  ;;  %s690_s6 = sshll.u32 (!%p147_p10), %s866_s12, 7 }
  0x11   : > { %s546_s15 = scalar_lea.hbm (!%p147_p10), %s1229_s2, %s690_s6  ;;  %s533_s18 = scalar_lea.sflag (!%p147_p10), [#allocation3], %s174_s3 }
  0x12   : > { %s549_s16 = sshll.u32 (!%p147_p10), %s546_s15, 4  ;;  %s816_s26 = scalar_lea.hbm (!%p147_p10), %s1229_s2, 256  ;;  %s550_s16 = int_to_ptr.hbm [resolvable:$true] %s549_s16 }
  0x13   : > { %s810_s20 = sshra.s32 (!%p147_p10), %s550_s16, 4  ;;  %s811_s20 = int_to_ptr.hbm [resolvable:$true] %s810_s20 }
  0x14   : > { %s950_s23 = scalar_select %p178_p11, %s866_s12, 1  ;;  %vm225_vm0 = vcmask 23552  }
  0x15   : > { %s547_s12 = sshll.u32 %s1170_s5, 4  ;;  %p817_p1 = scmp.lt.s32.totalorder %s811_s20, %s1229_s2  ;;  %s548_s12 = int_to_ptr.vmem [resolvable:$true] %s547_s12 }
  0x16   : > { %s688_s24 = sshll.u32 %s950_s23, 7  ;;  %s812_s23 = scalar_lea.hbm %s811_s20, 128 }
  0x17   : > { %s958_s27 = scalar_lea.vmem %s1228_s1, %s688_s24  ;;  %s1133_s30 = scalar_lea.vmem %s1227_s0, %s688_s24 }
  0x18   : > { %v961_v0 = vld [vmem:[%s958_s27] sm:$0xff]  ;;  %v964_v1 = vld [vmem:[%s958_s27 + $0x10] sm:$0xff]  ;;  %v974_v5 = vld [vmem:[%s958_s27 + $0x8] sm:$0xff]  ;;  %p813_p12 = scmp.ne.s32.totalorder %s811_s20, %s812_s23  ;;  %p818_p2 = scmp.lt.s32.totalorder %s816_s26, %s812_s23 }
  0x19   : > { %v387_v2 = vmul.f32 %v961_v0, %v961_v0  ;;  %v389_v3 = vmul.f32 %v964_v1, %v964_v1  ;;  %v971_v4 = vld [vmem:[%s958_s27 + $0x20] sm:$0xff]  ;;  %v977_v6 = vld [vmem:[%s958_s27 + $0x18] sm:$0xff]  ;;  %v984_v10 = vld [vmem:[%s958_s27 + $0x28] sm:$0xff]  ;;  %v388_v13 = vmul.f32 %v974_v5, %v974_v5 }
  0x1a   : > { %v391_v7 = vmul.f32 %v971_v4, %v971_v4  ;;  %v988_v12 = vld [vmem:[%s958_s27 + $0x78] sm:$0xff]  ;;  %v390_v14 = vmul.f32 %v977_v6, %v977_v6  ;;  %v392_v15 = vmul.f32 %v984_v10, %v984_v10  ;;  %v223_v16 = vld [vmem:[%s958_s27 + $0x70] sm:$0xff]  ;;  %v217_v22 = vld [vmem:[%s958_s27 + $0x40] sm:$0xff]  ;;  %p814_p13 = pnand %p813_p12, %p933_p4  ;;  %p819_p3 = por %p818_p2, %p817_p1 }
  0x1b   : > { %v403_v8 = vsel %vm225_vm0, %v387_v2, 0.0  ;;  %v409_v9 = vsel %vm225_vm0, %v389_v3, 0.0  ;;  %692 = vmatpush.xpose.msk.msra.mxu2 %vm225_vm0, %v988_v12  ;;  %693 = vmatpush.xpose.msk.msra.mxu3 %vm225_vm0, %v988_v12  ;;  %v406_v17 = vsel %vm225_vm0, %v388_v13, 0.0  ;;  %v1010_v20 = vld [vmem:[%s958_s27 + $0x38] sm:$0xff]  ;;  %v1013_v21 = vld [vmem:[%s958_s27 + $0x30] sm:$0xff]  ;;  %v222_v23 = vld [vmem:[%s958_s27 + $0x68] sm:$0xff]  ;;  %v395_v26 = vmul.f32 %v217_v22, %v217_v22 }
  0x1c   : > { %404 = vadd.xlane.f32.xlu0 %v403_v8  ;;  %410 = vadd.xlane.f32.xlu1 %v409_v9  ;;  %v415_v11 = vsel %vm225_vm0, %v391_v7, 0.0  ;;  %v412_v18 = vsel %vm225_vm0, %v390_v14, 0.0  ;;  %v418_v19 = vsel %vm225_vm0, %v392_v15, 0.0  ;;  %v394_v24 = vmul.f32 %v1010_v20, %v1010_v20  ;;  %v221_v27 = vld [vmem:[%s958_s27 + $0x60] sm:$0xff]  ;;  %v219_v30 = vld [vmem:[%s958_s27 + $0x50] sm:$0xff]  ;;  %v218_v32 = vld [vmem:[%s958_s27 + $0x48] sm:$0xff]  ;;  %p815_p0 = pneg %p814_p13 }
  0x1d   : > { %416 = vadd.xlane.f32.xlu2 %v415_v11  ;;  %651 = vmatpush.xpose.msk.msra.mxu0 %vm225_vm0, %v988_v12  ;;  %v393_v25 = vmul.f32 %v1013_v21, %v1013_v21  ;;  %v427_v31 = vsel %vm225_vm0, %v395_v26, 0.0  ;;  %v220_v33 = vld [vmem:[%s958_s27 + $0x58] sm:$0xff]  ;;  %v397_v34 = vmul.f32 %v219_v30, %v219_v30  ;;  %v396_v35 = vmul.f32 %v218_v32, %v218_v32  ;;  %v201_v48 = vld [vmem:[%s1133_s30 + $0x40] sm:$0xff]  ;;  %v202_v52 = vld [vmem:[%s1133_s30 + $0x48] sm:$0xff] }
  0x1e   : > { %691 = vmatpush.xpose.msk.msra.mxu1 %vm225_vm0, %v988_v12  ;;  %v424_v28 = vsel %vm225_vm0, %v394_v24, 0.0  ;;  %v398_v36 = vmul.f32 %v220_v33, %v220_v33  ;;  %v400_v40 = vmul.f32 %v222_v23, %v222_v23  ;;  %v399_v41 = vmul.f32 %v221_v27, %v221_v27  ;;  %v205_v49 = vld [vmem:[%s1133_s30 + $0x60] sm:$0xff]  ;;  %v206_v53 = vld [vmem:[%s1133_s30 + $0x68] sm:$0xff]  ;;  %v203_v56 = vld [vmem:[%s1133_s30 + $0x50] sm:$0xff]  ;;  %p820_p5 = pnand %p819_p3, %p815_p0 }
  0x1f   : > { %695 = vmatpush.xpose.msk.msra.mxu2 %vm225_vm0, %v223_v16  ;;  %696 = vmatpush.xpose.msk.msra.mxu3 %vm225_vm0, %v223_v16  ;;  %v421_v29 = vsel %vm225_vm0, %v393_v25, 0.0  ;;  %v433_v37 = vsel %vm225_vm0, %v397_v34, 0.0  ;;  %v430_v38 = vsel %vm225_vm0, %v396_v35, 0.0  ;;  %v401_v42 = vmul.f32 %v223_v16, %v223_v16  ;;  %v193_v50 = vld [vmem:[%s1133_s30] sm:$0xff]  ;;  %v194_v54 = vld [vmem:[%s1133_s30 + $0x8] sm:$0xff]  ;;  %v207_v57 = vld [vmem:[%s1133_s30 + $0x70] sm:$0xff] }
  0x20   : > { %v436_v39 = vsel %vm225_vm0, %v398_v36, 0.0  ;;  %v442_v43 = vsel %vm225_vm0, %v400_v40, 0.0  ;;  %v439_v44 = vsel %vm225_vm0, %v399_v41, 0.0  ;;  %v402_v46 = vmul.f32 %v988_v12, %v988_v12  ;;  %v197_v51 = vld [vmem:[%s1133_s30 + $0x20] sm:$0xff]  ;;  %v198_v55 = vld [vmem:[%s1133_s30 + $0x28] sm:$0xff]  ;;  %v195_v58 = vld [vmem:[%s1133_s30 + $0x10] sm:$0xff] }
  0x21   : > { %652 = vmatpush.xpose.msk.msra.mxu0 %vm225_vm0, %v223_v16  ;;  %v445_v45 = vsel %vm225_vm0, %v401_v42, 0.0  ;;  %v199_v59 = vld [vmem:[%s1133_s30 + $0x30] sm:$0xff]  ;;  %v204_v61 = vld [vmem:[%s1133_s30 + $0x58] sm:$0xff] }
  0x22   : > { %694 = vmatpush.xpose.msk.msra.mxu1 %vm225_vm0, %v223_v16  ;;  %v448_v47 = vsel %vm225_vm0, %v402_v46, 0.0  ;;  %v208_v62 = vld [vmem:[%s1133_s30 + $0x78] sm:$0xff] }
  0x23   : > { %698 = vmatpush.xpose.msk.msra.mxu2 %vm225_vm0, %v222_v23  ;;  %699 = vmatpush.xpose.msk.msra.mxu3 %vm225_vm0, %v222_v23  ;;  %v196_v63 = vld [vmem:[%s1133_s30 + $0x18] sm:$0xff] }
  0x24   : > { %407 = vadd.xlane.f32.xlu0 %v406_v17  ;;  %413 = vadd.xlane.f32.xlu1 %v412_v18 }
  0x25   : > { %419 = vadd.xlane.f32.xlu2 %v418_v19  ;;  %653 = vmatpush.xpose.msk.msra.mxu0 %vm225_vm0, %v222_v23 }
  0x26   : > { %697 = vmatpush.xpose.msk.msra.mxu1 %vm225_vm0, %v222_v23 }
  0x27   : > { %701 = vmatpush.xpose.msk.msra.mxu2 %vm225_vm0, %v221_v27  ;;  %702 = vmatpush.xpose.msk.msra.mxu3 %vm225_vm0, %v221_v27 }
  0x29   : > { %654 = vmatpush.xpose.msk.msra.mxu0 %vm225_vm0, %v221_v27 }
  0x2a   : > { %700 = vmatpush.xpose.msk.msra.mxu1 %vm225_vm0, %v221_v27 }
  0x2b   : > { %704 = vmatpush.xpose.msk.msra.mxu2 %vm225_vm0, %v220_v33  ;;  %705 = vmatpush.xpose.msk.msra.mxu3 %vm225_vm0, %v220_v33 }
  0x2c   : > { %425 = vadd.xlane.f32.xlu1 %v424_v28  ;;  %422 = vadd.xlane.f32.xlu0 %v421_v29 }
  0x2d   : > { %428 = vadd.xlane.f32.xlu2 %v427_v31  ;;  %655 = vmatpush.xpose.msk.msra.mxu0 %vm225_vm0, %v220_v33 }
  0x2e   : > { %703 = vmatpush.xpose.msk.msra.mxu1 %vm225_vm0, %v220_v33 }
  0x2f   : > { %707 = vmatpush.xpose.msk.msra.mxu2 %vm225_vm0, %v219_v30  ;;  %708 = vmatpush.xpose.msk.msra.mxu3 %vm225_vm0, %v219_v30 }
  0x31   : > { %656 = vmatpush.xpose.msk.msra.mxu0 %vm225_vm0, %v219_v30 }
  0x32   : > { %706 = vmatpush.xpose.msk.msra.mxu1 %vm225_vm0, %v219_v30 }
  0x33   : > { %710 = vmatpush.xpose.msk.msra.mxu2 %vm225_vm0, %v218_v32  ;;  %711 = vmatpush.xpose.msk.msra.mxu3 %vm225_vm0, %v218_v32 }
  0x34   : > { %434 = vadd.xlane.f32.xlu1 %v433_v37  ;;  %431 = vadd.xlane.f32.xlu0 %v430_v38 }
  0x35   : > { %437 = vadd.xlane.f32.xlu2 %v436_v39  ;;  %657 = vmatpush.xpose.msk.msra.mxu0 %vm225_vm0, %v218_v32 }
  0x36   : > { %709 = vmatpush.xpose.msk.msra.mxu1 %vm225_vm0, %v218_v32 }
  0x37   : > { %713 = vmatpush.xpose.msk.msra.mxu2 %vm225_vm0, %v217_v22  ;;  %714 = vmatpush.xpose.msk.msra.mxu3 %vm225_vm0, %v217_v22 }
  0x39   : > { %658 = vmatpush.xpose.msk.msra.mxu0 %vm225_vm0, %v217_v22 }
  0x3a   : > { %712 = vmatpush.xpose.msk.msra.mxu1 %vm225_vm0, %v217_v22 }
  0x3b   : > { %716 = vmatpush.xpose.msk.msra.mxu2 %vm225_vm0, %v1010_v20  ;;  %717 = vmatpush.xpose.msk.msra.mxu3 %vm225_vm0, %v1010_v20 }
  0x3c   : > { %443 = vadd.xlane.f32.xlu1 %v442_v43  ;;  %440 = vadd.xlane.f32.xlu0 %v439_v44 }
  0x3d   : > { %446 = vadd.xlane.f32.xlu2 %v445_v45  ;;  %659 = vmatpush.xpose.msk.msra.mxu0 %vm225_vm0, %v1010_v20 }
  0x3e   : > { %715 = vmatpush.xpose.msk.msra.mxu1 %vm225_vm0, %v1010_v20 }
  0x3f   : > { %719 = vmatpush.xpose.msk.msra.mxu2 %vm225_vm0, %v1013_v21  ;;  %720 = vmatpush.xpose.msk.msra.mxu3 %vm225_vm0, %v1013_v21 }
  0x41   : > { %660 = vmatpush.xpose.msk.msra.mxu0 %vm225_vm0, %v1013_v21 }
  0x42   : > { %718 = vmatpush.xpose.msk.msra.mxu1 %vm225_vm0, %v1013_v21 }
  0x43   : > { %722 = vmatpush.xpose.msk.msra.mxu2 %vm225_vm0, %v984_v10  ;;  %723 = vmatpush.xpose.msk.msra.mxu3 %vm225_vm0, %v984_v10 }
  0x44   : > { %449 = vadd.xlane.f32.xlu0 %v448_v47 }
  0x45   : > { %661 = vmatpush.xpose.msk.msra.mxu0 %vm225_vm0, %v984_v10 }
  0x46   : > { %721 = vmatpush.xpose.msk.msra.mxu1 %vm225_vm0, %v984_v10 }
  0x47   : > { %725 = vmatpush.xpose.msk.msra.mxu2 %vm225_vm0, %v971_v4  ;;  %726 = vmatpush.xpose.msk.msra.mxu3 %vm225_vm0, %v971_v4 }
  0x49   : > { %662 = vmatpush.xpose.msk.msra.mxu0 %vm225_vm0, %v971_v4 }
  0x4a   : > { %724 = vmatpush.xpose.msk.msra.mxu1 %vm225_vm0, %v971_v4 }
  0x4b   : > { %728 = vmatpush.xpose.msk.msra.mxu2 %vm225_vm0, %v977_v6  ;;  %729 = vmatpush.xpose.msk.msra.mxu3 %vm225_vm0, %v977_v6 }
  0x4d   : > { %663 = vmatpush.xpose.msk.msra.mxu0 %vm225_vm0, %v977_v6 }
  0x4e   : > { %727 = vmatpush.xpose.msk.msra.mxu1 %vm225_vm0, %v977_v6 }
  0x4f   : > { %731 = vmatpush.xpose.msk.msra.mxu2 %vm225_vm0, %v964_v1  ;;  %732 = vmatpush.xpose.msk.msra.mxu3 %vm225_vm0, %v964_v1 }
  0x51   : > { %664 = vmatpush.xpose.msk.msra.mxu0 %vm225_vm0, %v964_v1 }
  0x52   : > { %730 = vmatpush.xpose.msk.msra.mxu1 %vm225_vm0, %v964_v1 }
  0x53   : > { %734 = vmatpush.xpose.msk.msra.mxu2 %vm225_vm0, %v974_v5  ;;  %735 = vmatpush.xpose.msk.msra.mxu3 %vm225_vm0, %v974_v5 }
  0x55   : > { %665 = vmatpush.xpose.msk.msra.mxu0 %vm225_vm0, %v974_v5 }
  0x56   : > { %733 = vmatpush.xpose.msk.msra.mxu1 %vm225_vm0, %v974_v5 }
  0x57   : > { %737 = vmatpush.xpose.msk.msra.mxu2 %vm225_vm0, %v961_v0  ;;  %738 = vmatpush.xpose.msk.msra.mxu3 %vm225_vm0, %v961_v0 }
  0x59   : > { %666 = vmatpush.xpose.msk.msra.mxu0 %vm225_vm0, %v961_v0 }
  0x5a   : > { %736 = vmatpush.xpose.msk.msra.mxu1 %vm225_vm0, %v961_v0  ;;  %675 = vmatmul.msk.f32.vlgmr.msra.gmra.mxu2 %vm225_vm0, %v201_v48  ;;  %v200_v0 = vld [vmem:[%s1133_s30 + $0x38] sm:$0xff] }
  0x5b   : > { %679 = vmatmul.msk.f32.vlgmr.msra.gmra.mxu3 %vm225_vm0, %v205_v49 }
  0x5c   : > { %667 = vmatmul.msk.f32.vlgmr.msra.gmra.mxu0 %vm225_vm0, %v193_v50 }
  0x5d   : > { %671 = vmatmul.msk.f32.vlgmr.msra.gmra.mxu1 %vm225_vm0, %v197_v51 }
  0x62   : > { %676 = vmatmul.msk.f32.gmra.mxu2 %vm225_vm0, %v202_v52 }
  0x63   : > { %680 = vmatmul.msk.f32.gmra.mxu3 %vm225_vm0, %v206_v53 }
  0x64   : > { %668 = vmatmul.msk.f32.gmra.mxu0 %vm225_vm0, %v194_v54 }
  0x65   : > { %672 = vmatmul.msk.f32.gmra.mxu1 %vm225_vm0, %v198_v55 }
  0x6a   : > { %677 = vmatmul.msk.f32.gmra.mxu2 %vm225_vm0, %v203_v56 }
  0x6b   : > { %681 = vmatmul.msk.f32.gmra.mxu3 %vm225_vm0, %v207_v57 }
  0x6c   : > { %669 = vmatmul.msk.f32.gmra.mxu0 %vm225_vm0, %v195_v58 }
  0x6d   : > { %673 = vmatmul.msk.f32.gmra.mxu1 %vm225_vm0, %v199_v59 }
  0x72   : > { %678 = vmatmul.msk.f32.gmra.mxu2 %vm225_vm0, %v204_v61 }
  0x73   : > { %682 = vmatmul.msk.f32.gmra.mxu3 %vm225_vm0, %v208_v62 }
  0x74   : > { %670 = vmatmul.msk.f32.gmra.mxu0 %vm225_vm0, %v196_v63 }
  0x75   : > { %674 = vmatmul.msk.f32.gmra.mxu1 %vm225_vm0, %v200_v0 }
  0x8f   : > { %v405_v60 = vpop.xlane.xlu0 %404  ;;  %v411_v2 = vpop.xlane.xlu1 %410 }
  0x90   : > { %467 = vxpose.xlu1.b32.start [1/16] (narrow) %v405_v60, 8  ;;  %v417_v4 = vpop.xlane.xlu2 %416 }
  0x97   : > { %v408_v1 = vpop.xlane.xlu0 %407  ;;  %v414_v3 = vpop.xlane.xlu1 %413 }
  0x98   : > { %468 = vxpose.xlu1.b32.cont [2/16] (narrow) %v408_v1, 8  ;;  %v420_v5 = vpop.xlane.xlu2 %419 }
  0x9f   : > { %v423_v6 = vpop.xlane.xlu0 %422  ;;  %v426_v7 = vpop.xlane.xlu1 %425 }
  0xa0   : > { %469 = vxpose.xlu1.b32.cont [3/16] (narrow) %v411_v2, 8  ;;  %v429_v8 = vpop.xlane.xlu2 %428 }
  0xa7   : > { %v432_v9 = vpop.xlane.xlu0 %431  ;;  %v435_v10 = vpop.xlane.xlu1 %434 }
  0xa8   : > { %470 = vxpose.xlu1.b32.cont [4/16] (narrow) %v414_v3, 8  ;;  %v438_v11 = vpop.xlane.xlu2 %437 }
  0xaf   : > { %v441_v12 = vpop.xlane.xlu0 %440  ;;  %v444_v13 = vpop.xlane.xlu1 %443 }
  0xb0   : > { %471 = vxpose.xlu1.b32.cont [5/16] (narrow) %v417_v4, 8  ;;  %v447_v14 = vpop.xlane.xlu2 %446 }
  0xb7   : > { %v450_v15 = vpop.xlane.xlu0 %449 }
  0xb8   : > { %472 = vxpose.xlu1.b32.cont [6/16] (narrow) %v420_v5, 8 }
  0xc0   : > { %473 = vxpose.xlu1.b32.cont [7/16] (narrow) %v423_v6, 8 }
  0xc8   : > { %474 = vxpose.xlu1.b32.cont [8/16] (narrow) %v426_v7, 8 }
  0xd0   : > { %475 = vxpose.xlu1.b32.cont [9/16] (narrow) %v429_v8, 8 }
  0xd8   : > { %476 = vxpose.xlu1.b32.cont [10/16] (narrow) %v432_v9, 8 }
  0xd9   : > { %v339_v16 = vpop.f32.mrf.mxu0 }
  0xda   : > { %v351_v17 = vpop.f32.mrf.mxu1  ;;  %v451_v38 = vmul.f32 2.0, %v339_v16 }
  0xdb   : > { %v455_v46 = vmul.f32 2.0, %v351_v17 }
  0xdd   : > { %v363_v18 = vpop.f32.mrf.mxu2 }
  0xde   : > { %v375_v19 = vpop.f32.mrf.mxu3  ;;  %v459_v52 = vmul.f32 2.0, %v363_v18 }
  0xdf   : > { %v463_v58 = vmul.f32 2.0, %v375_v19 }
  0xe0   : > { %477 = vxpose.xlu1.b32.cont [11/16] (narrow) %v435_v10, 8 }
  0xe1   : > { %v342_v20 = vpop.f32.mrf.mxu0 }
  0xe2   : > { %v354_v21 = vpop.f32.mrf.mxu1  ;;  %v452_v42 = vmul.f32 2.0, %v342_v20 }
  0xe3   : > { %v456_v48 = vmul.f32 2.0, %v354_v21 }
  0xe5   : > { %v366_v22 = vpop.f32.mrf.mxu2 }
  0xe6   : > { %v378_v23 = vpop.f32.mrf.mxu3  ;;  %v460_v54 = vmul.f32 2.0, %v366_v22 }
  0xe7   : > { %v464_v60 = vmul.f32 2.0, %v378_v23 }
  0xe8   : > { %478 = vxpose.xlu1.b32.cont [12/16] (narrow) %v438_v11, 8 }
  0xe9   : > { %v345_v24 = vpop.f32.mrf.mxu0 }
  0xea   : > { %v357_v25 = vpop.f32.mrf.mxu1  ;;  %v453_v44 = vmul.f32 2.0, %v345_v24 }
  0xeb   : > { %v457_v50 = vmul.f32 2.0, %v357_v25 }
  0xed   : > { %v369_v26 = vpop.f32.mrf.mxu2 }
  0xee   : > { %v381_v27 = vpop.f32.mrf.mxu3  ;;  %v461_v56 = vmul.f32 2.0, %v369_v26 }
  0xef   : > { %v465_v62 = vmul.f32 2.0, %v381_v27 }
  0xf0   : > { %479 = vxpose.xlu1.b32.cont [13/16] (narrow) %v441_v12, 8 }
  0xf1   : > { %v348_v28 = vpop.f32.mrf.mxu0 }
  0xf2   : > { %v360_v29 = vpop.f32.mrf.mxu1  ;;  %v454_v32 = vmul.f32 2.0, %v348_v28 }
  0xf3   : > { %v458_v33 = vmul.f32 2.0, %v360_v29 }
  0xf5   : > { %v372_v30 = vpop.f32.mrf.mxu2 }
  0xf6   : > { %v384_v31 = vpop.f32.mrf.mxu3  ;;  %v462_v34 = vmul.f32 2.0, %v372_v30 }
  0xf7   : > { %v466_v36 = vmul.f32 2.0, %v384_v31 }
  0xf8   : > { %480 = vxpose.xlu1.b32.cont [14/16] (narrow) %v444_v13, 8 }
 0x100   : > { %481 = vxpose.xlu1.b32.cont [15/16] (narrow) %v447_v14, 8 }
 0x108   : > { %482 = vxpose.xlu1.b32.end [16/16] (narrow) %v450_v15, 8 }
 0x134   : > { %v483_v35 = vpop.trf.xlu1 }
 0x135   : > { %v499_v37 = vperm.slane %v483_v35, 0 }
 0x137   : > { %v503_v39 = vsub.f32 %v454_v32, %v499_v37  ;;  %v507_v40 = vsub.f32 %v458_v33, %v499_v37  ;;  %v511_v41 = vsub.f32 %v462_v34, %v499_v37  ;;  %v515_v43 = vsub.f32 %v466_v36, %v499_v37 }
 0x138   : > { %v500_v45 = vsub.f32 %v451_v38, %v499_v37  ;;  %v501_v47 = vsub.f32 %v452_v42, %v499_v37  ;;  %v502_v49 = vsub.f32 %v453_v44, %v499_v37  ;;  %v504_v51 = vsub.f32 %v455_v46, %v499_v37 }
 0x139   : > { %519 = vst [vmem:[%s1170_s5 + $0x18] sm:$0xff] %v503_v39  ;;  %v505_v53 = vsub.f32 %v456_v48, %v499_v37  ;;  %v506_v55 = vsub.f32 %v457_v50, %v499_v37  ;;  %v508_v57 = vsub.f32 %v459_v52, %v499_v37  ;;  %v509_v59 = vsub.f32 %v460_v54, %v499_v37 }
 0x13a   : > { %523 = vst [vmem:[%s1170_s5 + $0x38] sm:$0xff] %v507_v40  ;;  %v510_v61 = vsub.f32 %v461_v56, %v499_v37  ;;  %v512_v63 = vsub.f32 %v463_v58, %v499_v37  ;;  %v513_v0 = vsub.f32 %v464_v60, %v499_v37  ;;  %v514_v1 = vsub.f32 %v465_v62, %v499_v37 }
 0x13b   : > { %527 = vst [vmem:[%s1170_s5 + $0x58] sm:$0xff] %v511_v41 }
 0x13c   : > { %531 = vst [vmem:[%s1170_s5 + $0x78] sm:$0xff] %v515_v43 }
 0x13d   : > { %516 = vst [vmem:[%s1170_s5] sm:$0xff] %v500_v45 }
 0x13e   : > { %517 = vst [vmem:[%s1170_s5 + $0x8] sm:$0xff] %v501_v47 }
 0x13f   : > { %518 = vst [vmem:[%s1170_s5 + $0x10] sm:$0xff] %v502_v49 }
 0x140   : > { %520 = vst [vmem:[%s1170_s5 + $0x20] sm:$0xff] %v504_v51 }
 0x141   : > { %521 = vst [vmem:[%s1170_s5 + $0x28] sm:$0xff] %v505_v53 }
 0x142   : > { %522 = vst [vmem:[%s1170_s5 + $0x30] sm:$0xff] %v506_v55 }
 0x143   : > { %524 = vst [vmem:[%s1170_s5 + $0x40] sm:$0xff] %v508_v57 }
 0x144   : > { %525 = vst [vmem:[%s1170_s5 + $0x48] sm:$0xff] %v509_v59 }
 0x145   : > { %526 = vst [vmem:[%s1170_s5 + $0x50] sm:$0xff] %v510_v61 }
 0x146   : > { %528 = vst [vmem:[%s1170_s5 + $0x60] sm:$0xff] %v512_v63 }
 0x147   : > { %529 = vst [vmem:[%s1170_s5 + $0x68] sm:$0xff] %v513_v0 }
 0x148   : > { %530 = vst [vmem:[%s1170_s5 + $0x70] sm:$0xff] %v514_v1 }
 0x149   : > { %823 = shalt.err (!%p820_p5)
}
 0x14a   : > { %s876_s29 = smov 128   ;;  %s877_s30 = smov 8  }
 0x14b   : > { %739 = dma.vmem_to_hbm [thread:$0]  (%p933_p4), %s548_s12, 2048, %s550_s16, %s533_s18, %s876_s29, %s876_s29, %s877_s30  }
 0x14c PF: > { %p745_p6 = scmp.ge.s32.totalorder %s874_s14, 2  ;;  %s564_s3 = sand.u32 1, %s854_s9  }
 0x14d   : > { %s565_s4 = scalar_lea.sflag [#allocation3], %s564_s3 }
 0x14e   : > { %p742_p7 = pnand %p745_p6, %p940_p8 }
 0x150   : > { %p743_p9 = pneg %p742_p7 }
 0x152   : > { %849 = dma.done.wait (%p743_p9), %s565_s4, 2048  }
 0x153   : > { %851 = vsyncadd (%p743_p9), %s565_s4, 4294965248  ;;  %s15_s14 = sadd.s32 1, %s874_s14   ;;  %s1232_s9 = smov %s858_s10 }
 0x154   : > { %p12_p10 = scmp.ge.s32.totalorder %s15_s14, 4   ;;  %s1233_s10 = smov %s862_s11 }
 0x155   : > { %s1234_s11 = smov %s946_s22  ;;  %s1235_s12 = smov %s870_s13 }
 0x156   : > { %s1236_s13 = smov %s1238_s17  ;;  %14 = sbr.rel (!%p12_p10) target bundleno = 4 (0x4), region = 66 }
 0x15b   :  { %571 = vsyncpa [#allocation3], 1 }
 0x15c   :  { %573 = vsyncpa [#allocation3 + $0x1], 1 }

</bundles_post_ra>
